<compile_context>
chip_gen: v7x
topology: tpu7x:2x2x1
jax: 0.10.0
libtpu: 0.0.40
codegen_flags: <defaults>
</compile_context>

<pallas_src>
import functools
import math

import jax
import jax.numpy as jnp
from jax import lax
from jax.experimental import pallas as pl
from jax.experimental.pallas import tpu as pltpu


_BIG = 8.5e37     # finite sentinel (~ f32 max / 4) for "no candidate here"
_EPS = 1e-8       # matches the reference's elementwise `+ 1e-08` before the norm


def _pairwise_stats_kernel(xr_ref, xc_ref, rt_ref, ct_ref, lr_ref, lc_ref,
                           pos_ref, neg_ref, rmx_ref, *, n_valid):
    """One (row-tile i, column-tile j) step of the streaming hard-mining pass."""
    i = pl.program_id(0)
    j = pl.program_id(1)
    tm = xr_ref.shape[0]
    tn = xc_ref.shape[0]

    # Gram matrix on the MXU, contracting the embedding dim of both tiles
    # ("md,nd->mn") -- no transposed copy of x is ever materialized.
    gram = lax.dot_general(xr_ref[...], xc_ref[...], (((1,), (1,)), ((), ())),
                           preferred_element_type=jnp.float32)        # (tm, tn)

    # ||x_i - x_j + eps||^2 = rt_i + ct_j - 2<x_i, x_j>, with
    #   rt = ||x||^2 + 2*eps*sum(x) + D*eps^2 ,  ct = ||x||^2 - 2*eps*sum(x)
    # both precomputed in the wrapper.  Clamp tiny negative cancellation noise.
    sqd = jnp.maximum(rt_ref[...] + ct_ref[...] - 2.0 * gram, 0.0)     # (tm, tn)

    eq = lr_ref[...] == lc_ref[...]          # (tm,1)==(1,tn) -> (tm,tn) bool

    # Reset the per-row running stats to their identities at the first column
    # tile; afterwards every path just max/min-accumulates into the resident
    # output blocks.
    @pl.when(j == 0)
    def _init():
        pos_ref[...] = jnp.zeros(pos_ref.shape, pos_ref.dtype)
        neg_ref[...] = jnp.full(neg_ref.shape, _BIG, neg_ref.dtype)
        rmx_ref[...] = jnp.zeros(rmx_ref.shape, rmx_ref.dtype)

    def _accumulate(tile_pos, tile_neg, tile_max):
        pos_ref[...] = jnp.maximum(pos_ref[...], tile_pos)
        neg_ref[...] = jnp.minimum(neg_ref[...], tile_neg)
        rmx_ref[...] = jnp.maximum(rmx_ref[...], tile_max)

    # Scalar-gated fast path: most tiles neither touch the diagonal nor contain
    # padded columns, so the diagonal / validity masks can be skipped entirely.
    has_pad = (j + 1) * tn > n_valid
    touches_diag = jnp.logical_and(i * tm < (j + 1) * tn, j * tn < (i + 1) * tm)
    needs_mask = jnp.logical_or(has_pad, touches_diag)

    @pl.when(jnp.logical_not(needs_mask))
    def _clean():
        _accumulate(
            jnp.max(jnp.where(eq, sqd, 0.0), axis=1, keepdims=True),
            jnp.min(jnp.where(eq, _BIG, sqd), axis=1, keepdims=True),
            jnp.max(sqd, axis=1, keepdims=True),
        )

    @pl.when(needs_mask)
    def _masked():
        # Small broadcastable iotas instead of two full (tm, tn) int32 tiles.
        row_ids = i * tm + lax.broadcasted_iota(jnp.int32, (tm, 1), 0)   # (tm,1)
        col_ids = j * tn + lax.broadcasted_iota(jnp.int32, (1, tn), 1)   # (1,tn)
        valid = col_ids < n_valid                                        # (1,tn)
        not_diag = row_ids != col_ids                                    # (tm,tn)
        pos_mask = jnp.logical_and(jnp.logical_and(eq, not_diag), valid)
        neg_mask = jnp.logical_and(jnp.logical_not(eq), valid)
        _accumulate(
            jnp.max(jnp.where(pos_mask, sqd, 0.0), axis=1, keepdims=True),
            jnp.min(jnp.where(neg_mask, sqd, _BIG), axis=1, keepdims=True),
            jnp.max(jnp.where(valid, sqd, 0.0), axis=1, keepdims=True),
        )


def _round_up(x, m):
    return (x + m - 1) // m * m


def _pick_tiles(n, itemsize, block_rows, block_cols):
    """Choose (tm, tn, n_pad).

    tn is a power-of-two multiple of 128 (lane axis of the (1, tn) blocks);
    tm is a sublane-aligned (dtype-aware) divisor or multiple of tn, capped so
    the 'parallel' row axis has >= 2 tiles whenever the batch allows it.
    n_pad = round_up(n, max(tm, tn)) is then a multiple of both tiles.
    """
    sub = {1: 32, 2: 16}.get(itemsize, 8)          # dtype-aware sublane multiple

    tn = 128
    lim = min(max(block_cols, 128), _round_up(n, 128))
    while tn * 2 <= lim and tn < 512:
        tn *= 2

    cap = _round_up(n, sub)
    if n > sub:                                    # give both v7x cores work
        cap = min(cap, _round_up((n + 1) // 2, sub))
    want = max(sub, min(_round_up(block_rows, sub), cap))
    if want >= tn:
        tm = (want // tn) * tn                     # multiple of tn
    else:
        tm = tn                                    # power-of-two divisor of tn
        while tm > want and tm // 2 >= sub and (tm // 2) % sub == 0:
            tm //= 2

    n_pad = _round_up(n, max(tm, tn))
    return tm, tn, n_pad


def triplet_mining_loss(vector_batch, labels_batch, margin=1.0,
                        block_rows=512, block_cols=256):
    """vector_batch: (N, D) float, labels_batch: (N,) int -> scalar f32 loss."""
    n, d = vector_batch.shape
    itemsize = jnp.dtype(vector_batch.dtype).itemsize
    tm, tn, n_pad = _pick_tiles(n, itemsize, block_rows, block_cols)
    grid = (n_pad // tm, n_pad // tn)

    # Hoisted per-row terms (computed once, not per grid step); they fold the
    # reference's elementwise +1e-8 into the expansion:
    #   ||x_i - x_j + eps||^2 = rt_i + ct_j - 2<x_i, x_j>
    x_f = vector_batch.astype(jnp.float32)
    sq = jnp.sum(x_f * x_f, axis=-1)
    s = jnp.sum(x_f, axis=-1)
    rt = sq + (2.0 * _EPS) * s + d * _EPS * _EPS
    ct = sq - (2.0 * _EPS) * s

    pad_n = n_pad - n
    x_pad = jnp.pad(vector_batch, ((0, pad_n), (0, 0)))   # native dtype for MXU
    rt_col = jnp.pad(rt, (0, pad_n)).reshape(n_pad, 1)
    ct_row = jnp.pad(ct, (0, pad_n)).reshape(1, n_pad)
    lab = jnp.pad(labels_batch.astype(jnp.int32), (0, pad_n))
    lab_col = lab.reshape(n_pad, 1)                       # sublane layout (rows)
    lab_row = lab.reshape(1, n_pad)                       # lane layout (cols)

    # The column tile is the only per-step streamed operand; buffer it deeper
    # when the embedding dim is large enough for the DMA to be exposed.
    if d >= 1024:
        col_x_spec = pl.BlockSpec((tn, d), lambda i, j: (j, 0),
                                  pipeline_mode=pl.Buffered(3))
    else:
        col_x_spec = pl.BlockSpec((tn, d), lambda i, j: (j, 0))

    # Explicit VMEM budget: double-buffered x tiles + a handful of (tm, tn)
    # f32 intermediates; cap at 64 MiB so it never exceeds v7x's physical VMEM.
    est = (2 * (tm + tn) * d * itemsize       # double-buffered x tiles
           + 8 * tm * tn * 4                  # gram / sqd / mask intermediates
           + 4 * (tm + tn) * 8                # norm-term / label blocks
           + 6 * tm * 4)                      # (tm, 1) output blocks
    vmem_limit = int(min(max(2 * est, 32 * 1024 * 1024), 64 * 1024 * 1024))

    cost = pl.CostEstimate(
        flops=2 * n_pad * n_pad * d + 12 * n_pad * n_pad,
        transcendentals=0,
        bytes_accessed=(grid[0] * n_pad * d * itemsize    # streamed column tiles
                        + n_pad * d * itemsize            # row tiles
                        + 3 * n_pad * 4))                 # per-row stats

    stat = jax.ShapeDtypeStruct((n_pad, 1), jnp.float32)
    pos_sq, neg_sq, row_max_sq = pl.pallas_call(
        functools.partial(_pairwise_stats_kernel, n_valid=n),
        out_shape=(stat, stat, stat),
        grid=grid,
        in_specs=[
            pl.BlockSpec((tm, d), lambda i, j: (i, 0)),   # x, row tile
            col_x_spec,                                   # x, column tile
            pl.BlockSpec((tm, 1), lambda i, j: (i, 0)),   # row term
            pl.BlockSpec((1, tn), lambda i, j: (0, j)),   # col term
            pl.BlockSpec((tm, 1), lambda i, j: (i, 0)),   # labels (row layout)
            pl.BlockSpec((1, tn), lambda i, j: (0, j)),   # labels (col layout)
        ],
        out_specs=tuple(pl.BlockSpec((tm, 1), lambda i, j: (i, 0))
                        for _ in range(3)),
        compiler_params=pltpu.CompilerParams(
            dimension_semantics=("parallel", "arbitrary"),
            vmem_limit_bytes=vmem_limit),
        cost_estimate=cost,
    )(x_pad, x_pad, rt_col, ct_row, lab_col, lab_row)

    # O(N) epilogue in plain JAX (cheaper than a second lane-sparse kernel).
    pos_sq = pos_sq[:n, 0]
    neg_sq = neg_sq[:n, 0]
    row_max_sq = row_max_sq[:n, 0]

    gmax = jnp.sqrt(jnp.max(row_max_sq))                 # global max distance
    pos_d = jnp.sqrt(pos_sq)                             # furthest positive
    has_neg = neg_sq < (0.5 * _BIG)
    # Rows with no valid negative (all labels equal): the reference yields
    # min_j dists[i, :] + global_max; that min is the diagonal sqrt(D)*eps.
    neg_d = jnp.where(has_neg, jnp.sqrt(neg_sq), math.sqrt(d) * _EPS + gmax)
    tl = jnp.maximum(pos_d - neg_d + margin, 0.0)
    return jnp.mean(tl)


if __name__ == "__main__":
    key = jax.random.PRNGKey(0)
    kx, kl = jax.random.split(key)

    # Small shapes, but chosen so the tiled path is exercised: block_rows=64 /
    # block_cols=128 pads the batch to 256 -> grid = (4, 2), covering the
    # j-accumulation, the clean fast path, the diagonal-masked path and the
    # padded-column / padded-row handling.
    N, D = 144, 32
    x = jax.random.normal(kx, (N, D), dtype=jnp.float32)
    labels = jax.random.randint(kl, (N,), 0, 3, dtype=jnp.int32)

    loss = triplet_mining_loss(x, labels, margin=1.0,
                               block_rows=64, block_cols=128)
    loss = jax.block_until_ready(loss)

    # Plain-JAX mirror of the PyTorch reference for a sanity check.
    diff = x[:, None, :] - x[None, :, :] + _EPS
    dists = jnp.sqrt(jnp.sum(diff * diff, axis=-1))
    eqm = labels[:, None] == labels[None, :]
    diag = jnp.eye(N, dtype=bool)
    positive_dists = jnp.max(dists * (eqm & ~diag), axis=1)
    gmax = jnp.max(dists)
    negative_dists = jnp.min(dists + gmax * eqm, axis=1)
    ref = jnp.mean(jnp.maximum(positive_dists - negative_dists + 1.0, 0.0))

    assert jnp.isfinite(loss), float(loss)
    assert abs(float(loss) - float(ref)) < 1e-3, (float(loss), float(ref))
    print("KERNEL_OK")
</pallas_src>

<mosaic_0001>
module attributes {stable_mosaic.version = 11 : i64} {
  func.func @_pairwise_stats_kernel(%arg0: i32, %arg1: i32, %arg2: memref<64x32xf32, #tpu.memory_space<vmem>>, %arg3: memref<128x32xf32, #tpu.memory_space<vmem>>, %arg4: memref<64x1xf32, #tpu.memory_space<vmem>>, %arg5: memref<1x128xf32, #tpu.memory_space<vmem>>, %arg6: memref<64x1xi32, #tpu.memory_space<vmem>>, %arg7: memref<1x128xi32, #tpu.memory_space<vmem>>, %arg8: memref<64x1xf32, #tpu.memory_space<vmem>>, %arg9: memref<64x1xf32, #tpu.memory_space<vmem>>, %arg10: memref<64x1xf32, #tpu.memory_space<vmem>>) attributes {dimension_semantics = [#tpu.dimension_semantics<parallel>, #tpu.dimension_semantics<arbitrary>], iteration_bounds = array<i64: 4, 2>, scalar_prefetch = 0 : i64, scratch_operands = 0 : i64, tpu.core_type = #tpu.core_type<tc>, window_params = [{transform_indices = @transform_0, window_bounds = array<i64: 64, 32>}, {transform_indices = @transform_1, window_bounds = array<i64: 128, 32>}, {transform_indices = @transform_2, window_bounds = array<i64: 64, 1>}, {transform_indices = @transform_3, window_bounds = array<i64: 1, 128>}, {transform_indices = @transform_4, window_bounds = array<i64: 64, 1>}, {transform_indices = @transform_5, window_bounds = array<i64: 1, 128>}, {transform_indices = @transform_6, window_bounds = array<i64: 64, 1>}, {transform_indices = @transform_7, window_bounds = array<i64: 64, 1>}, {transform_indices = @transform_8, window_bounds = array<i64: 64, 1>}]} {
    %c0 = arith.constant 0 : index
    %c0_0 = arith.constant 0 : index
    %0 = vector.load %arg2[%c0, %c0_0] : memref<64x32xf32, #tpu.memory_space<vmem>>, vector<64x32xf32>
    %c0_1 = arith.constant 0 : index
    %c0_2 = arith.constant 0 : index
    %1 = vector.load %arg3[%c0_1, %c0_2] : memref<128x32xf32, #tpu.memory_space<vmem>>, vector<128x32xf32>
    %cst = arith.constant dense<0.000000e+00> : vector<64x128xf32>
    %2 = tpu.matmul %0, %1, %cst {dimension_numbers = #tpu.dot_dimension_numbers<[1], [1], [0], [0], [0, 0, 1, 0], [], []>} : vector<64x32xf32>, vector<128x32xf32>, vector<64x128xf32> -> vector<64x128xf32>
    %c0_3 = arith.constant 0 : index
    %c0_4 = arith.constant 0 : index
    %3 = vector.load %arg4[%c0_3, %c0_4] : memref<64x1xf32, #tpu.memory_space<vmem>>, vector<64x1xf32>
    %c0_5 = arith.constant 0 : index
    %c0_6 = arith.constant 0 : index
    %4 = vector.load %arg5[%c0_5, %c0_6] : memref<1x128xf32, #tpu.memory_space<vmem>>, vector<1x128xf32>
    %5 = vector.broadcast %3 : vector<64x1xf32> to vector<64x128xf32>
    %6 = vector.broadcast %4 : vector<1x128xf32> to vector<64x128xf32>
    %7 = arith.addf %5, %6 : vector<64x128xf32>
    %cst_7 = arith.constant 2.000000e+00 : f32
    %8 = vector.broadcast %cst_7 : f32 to vector<64x128xf32>
    %9 = arith.mulf %8, %2 : vector<64x128xf32>
    %10 = arith.subf %7, %9 : vector<64x128xf32>
    %cst_8 = arith.constant 0.000000e+00 : f32
    %11 = vector.broadcast %cst_8 : f32 to vector<64x128xf32>
    %12 = arith.maximumf %10, %11 : vector<64x128xf32>
    %c0_9 = arith.constant 0 : index
    %c0_10 = arith.constant 0 : index
    %13 = vector.load %arg6[%c0_9, %c0_10] : memref<64x1xi32, #tpu.memory_space<vmem>>, vector<64x1xi32>
    %c0_11 = arith.constant 0 : index
    %c0_12 = arith.constant 0 : index
    %14 = vector.load %arg7[%c0_11, %c0_12] : memref<1x128xi32, #tpu.memory_space<vmem>>, vector<1x128xi32>
    %15 = vector.broadcast %13 : vector<64x1xi32> to vector<64x128xi32>
    %16 = vector.broadcast %14 : vector<1x128xi32> to vector<64x128xi32>
    %17 = arith.cmpi eq, %15, %16 : vector<64x128xi32>
    %c0_i32 = arith.constant 0 : i32
    %18 = arith.cmpi eq, %arg1, %c0_i32 : i32
    %19 = arith.extui %18 : i1 to i32
    %c0_i32_13 = arith.constant 0 : i32
    %20 = arith.cmpi ne, %19, %c0_i32_13 : i32
    scf.if %20 {
      %cst_21 = arith.constant 0.000000e+00 : f32
      %39 = vector.broadcast %cst_21 : f32 to vector<64x1xf32>
      %c0_22 = arith.constant 0 : index
      %c0_23 = arith.constant 0 : index
      %40 = vector.load %arg8[%c0_22, %c0_23] : memref<64x1xf32, #tpu.memory_space<vmem>>, vector<64x1xf32>
      tpu.vector_store %arg8[%c0_22, %c0_23], %39 {strides = array<i32>} : memref<64x1xf32, #tpu.memory_space<vmem>>, vector<64x1xf32>,
      %cst_24 = arith.constant 8.500000e+37 : f32
      %41 = vector.broadcast %cst_24 : f32 to vector<64x1xf32>
      %c0_25 = arith.constant 0 : index
      %c0_26 = arith.constant 0 : index
      %42 = vector.load %arg9[%c0_25, %c0_26] : memref<64x1xf32, #tpu.memory_space<vmem>>, vector<64x1xf32>
      tpu.vector_store %arg9[%c0_25, %c0_26], %41 {strides = array<i32>} : memref<64x1xf32, #tpu.memory_space<vmem>>, vector<64x1xf32>,
      %cst_27 = arith.constant 0.000000e+00 : f32
      %43 = vector.broadcast %cst_27 : f32 to vector<64x1xf32>
      %c0_28 = arith.constant 0 : index
      %c0_29 = arith.constant 0 : index
      %44 = vector.load %arg10[%c0_28, %c0_29] : memref<64x1xf32, #tpu.memory_space<vmem>>, vector<64x1xf32>
      tpu.vector_store %arg10[%c0_28, %c0_29], %43 {strides = array<i32>} : memref<64x1xf32, #tpu.memory_space<vmem>>, vector<64x1xf32>,
    } else {
    }
    %c1_i32 = arith.constant 1 : i32
    %21 = arith.addi %arg1, %c1_i32 : i32
    %c128_i32 = arith.constant 128 : i32
    %22 = arith.muli %21, %c128_i32 : i32
    %c144_i32 = arith.constant 144 : i32
    %23 = arith.cmpi sgt, %22, %c144_i32 : i32
    %c64_i32 = arith.constant 64 : i32
    %24 = arith.muli %arg0, %c64_i32 : i32
    %c1_i32_14 = arith.constant 1 : i32
    %25 = arith.addi %arg1, %c1_i32_14 : i32
    %c128_i32_15 = arith.constant 128 : i32
    %26 = arith.muli %25, %c128_i32_15 : i32
    %27 = arith.cmpi slt, %24, %26 : i32
    %c128_i32_16 = arith.constant 128 : i32
    %28 = arith.muli %arg1, %c128_i32_16 : i32
    %c1_i32_17 = arith.constant 1 : i32
    %29 = arith.addi %arg0, %c1_i32_17 : i32
    %c64_i32_18 = arith.constant 64 : i32
    %30 = arith.muli %29, %c64_i32_18 : i32
    %31 = arith.cmpi slt, %28, %30 : i32
    %32 = arith.andi %27, %31 : i1
    %33 = arith.ori %23, %32 : i1
    %true = arith.constant true
    %34 = arith.xori %33, %true : i1
    %35 = arith.extui %34 : i1 to i32
    %c0_i32_19 = arith.constant 0 : i32
    %36 = arith.cmpi ne, %35, %c0_i32_19 : i32
    scf.if %36 {
      %cst_21 = arith.constant 0.000000e+00 : f32
      %39 = vector.broadcast %cst_21 : f32 to vector<64x128xf32>
      %40 = arith.select %17, %12, %39 : vector<64x128xi1>, vector<64x128xf32>
      %cst_22 = arith.constant dense<0xFF800000> : vector<64xf32>
      %41 = vector.multi_reduction <maximumf>, %40, %cst_22 [1] : vector<64x128xf32> to vector<64xf32>
      %42 = vector.shape_cast %41 : vector<64xf32> to vector<64x1xf32>
      %cst_23 = arith.constant 8.500000e+37 : f32
      %43 = vector.broadcast %cst_23 : f32 to vector<64x128xf32>
      %44 = arith.select %17, %43, %12 : vector<64x128xi1>, vector<64x128xf32>
      %cst_24 = arith.constant dense<0x7F800000> : vector<64xf32>
      %45 = vector.multi_reduction <minimumf>, %44, %cst_24 [1] : vector<64x128xf32> to vector<64xf32>
      %46 = vector.shape_cast %45 : vector<64xf32> to vector<64x1xf32>
      %cst_25 = arith.constant dense<0xFF800000> : vector<64xf32>
      %47 = vector.multi_reduction <maximumf>, %12, %cst_25 [1] : vector<64x128xf32> to vector<64xf32>
      %48 = vector.shape_cast %47 : vector<64xf32> to vector<64x1xf32>
      %c0_26 = arith.constant 0 : index
      %c0_27 = arith.constant 0 : index
      %49 = vector.load %arg8[%c0_26, %c0_27] : memref<64x1xf32, #tpu.memory_space<vmem>>, vector<64x1xf32>
      %50 = arith.maximumf %49, %42 : vector<64x1xf32>
      %c0_28 = arith.constant 0 : index
      %c0_29 = arith.constant 0 : index
      %51 = vector.load %arg8[%c0_28, %c0_29] : memref<64x1xf32, #tpu.memory_space<vmem>>, vector<64x1xf32>
      tpu.vector_store %arg8[%c0_28, %c0_29], %50 {strides = array<i32>} : memref<64x1xf32, #tpu.memory_space<vmem>>, vector<64x1xf32>,
      %c0_30 = arith.constant 0 : index
      %c0_31 = arith.constant 0 : index
      %52 = vector.load %arg9[%c0_30, %c0_31] : memref<64x1xf32, #tpu.memory_space<vmem>>, vector<64x1xf32>
      %53 = arith.minimumf %52, %46 : vector<64x1xf32>
      %c0_32 = arith.constant 0 : index
      %c0_33 = arith.constant 0 : index
      %54 = vector.load %arg9[%c0_32, %c0_33] : memref<64x1xf32, #tpu.memory_space<vmem>>, vector<64x1xf32>
      tpu.vector_store %arg9[%c0_32, %c0_33], %53 {strides = array<i32>} : memref<64x1xf32, #tpu.memory_space<vmem>>, vector<64x1xf32>,
      %c0_34 = arith.constant 0 : index
      %c0_35 = arith.constant 0 : index
      %55 = vector.load %arg10[%c0_34, %c0_35] : memref<64x1xf32, #tpu.memory_space<vmem>>, vector<64x1xf32>
      %56 = arith.maximumf %55, %48 : vector<64x1xf32>
      %c0_36 = arith.constant 0 : index
      %c0_37 = arith.constant 0 : index
      %57 = vector.load %arg10[%c0_36, %c0_37] : memref<64x1xf32, #tpu.memory_space<vmem>>, vector<64x1xf32>
      tpu.vector_store %arg10[%c0_36, %c0_37], %56 {strides = array<i32>} : memref<64x1xf32, #tpu.memory_space<vmem>>, vector<64x1xf32>,
    } else {
    }
    %37 = arith.extui %33 : i1 to i32
    %c0_i32_20 = arith.constant 0 : i32
    %38 = arith.cmpi ne, %37, %c0_i32_20 : i32
    scf.if %38 {
      %c64_i32_21 = arith.constant 64 : i32
      %39 = arith.muli %arg0, %c64_i32_21 : i32
      %40 = tpu.iota {dimensions = array<i32: 0>} : vector<64x1xi32>
      %41 = vector.broadcast %39 : i32 to vector<64x1xi32>
      %42 = arith.addi %41, %40 : vector<64x1xi32>
      %c128_i32_22 = arith.constant 128 : i32
      %43 = arith.muli %arg1, %c128_i32_22 : i32
      %44 = tpu.iota {dimensions = array<i32: 1>} : vector<1x128xi32>
      %45 = vector.broadcast %43 : i32 to vector<1x128xi32>
      %46 = arith.addi %45, %44 : vector<1x128xi32>
      %c144_i32_23 = arith.constant 144 : i32
      %47 = vector.broadcast %c144_i32_23 : i32 to vector<1x128xi32>
      %48 = arith.cmpi slt, %46, %47 : vector<1x128xi32>
      %49 = vector.broadcast %42 : vector<64x1xi32> to vector<64x128xi32>
      %50 = vector.broadcast %46 : vector<1x128xi32> to vector<64x128xi32>
      %51 = arith.cmpi ne, %49, %50 : vector<64x128xi32>
      %52 = arith.andi %17, %51 : vector<64x128xi1>
      %53 = vector.broadcast %48 : vector<1x128xi1> to vector<64x128xi1>
      %54 = arith.andi %52, %53 : vector<64x128xi1>
      %cst_24 = arith.constant dense<true> : vector<64x128xi1>
      %55 = arith.xori %17, %cst_24 : vector<64x128xi1>
      %56 = vector.broadcast %48 : vector<1x128xi1> to vector<64x128xi1>
      %57 = arith.andi %55, %56 : vector<64x128xi1>
      %cst_25 = arith.constant 0.000000e+00 : f32
      %58 = vector.broadcast %cst_25 : f32 to vector<64x128xf32>
      %59 = arith.select %54, %12, %58 : vector<64x128xi1>, vector<64x128xf32>
      %cst_26 = arith.constant dense<0xFF800000> : vector<64xf32>
      %60 = vector.multi_reduction <maximumf>, %59, %cst_26 [1] : vector<64x128xf32> to vector<64xf32>
      %61 = vector.shape_cast %60 : vector<64xf32> to vector<64x1xf32>
      %cst_27 = arith.constant 8.500000e+37 : f32
      %62 = vector.broadcast %cst_27 : f32 to vector<64x128xf32>
      %63 = arith.select %57, %12, %62 : vector<64x128xi1>, vector<64x128xf32>
      %cst_28 = arith.constant dense<0x7F800000> : vector<64xf32>
      %64 = vector.multi_reduction <minimumf>, %63, %cst_28 [1] : vector<64x128xf32> to vector<64xf32>
      %65 = vector.shape_cast %64 : vector<64xf32> to vector<64x1xf32>
      %cst_29 = arith.constant 0.000000e+00 : f32
      %66 = vector.shape_cast %48 : vector<1x128xi1> to vector<1x128xi1>
      %67 = vector.broadcast %66 : vector<1x128xi1> to vector<64x128xi1>
      %68 = vector.broadcast %cst_29 : f32 to vector<64x128xf32>
      %69 = arith.select %67, %12, %68 : vector<64x128xi1>, vector<64x128xf32>
      %cst_30 = arith.constant dense<0xFF800000> : vector<64xf32>
      %70 = vector.multi_reduction <maximumf>, %69, %cst_30 [1] : vector<64x128xf32> to vector<64xf32>
      %71 = vector.shape_cast %70 : vector<64xf32> to vector<64x1xf32>
      %c0_31 = arith.constant 0 : index
      %c0_32 = arith.constant 0 : index
      %72 = vector.load %arg8[%c0_31, %c0_32] : memref<64x1xf32, #tpu.memory_space<vmem>>, vector<64x1xf32>
      %73 = arith.maximumf %72, %61 : vector<64x1xf32>
      %c0_33 = arith.constant 0 : index
      %c0_34 = arith.constant 0 : index
      %74 = vector.load %arg8[%c0_33, %c0_34] : memref<64x1xf32, #tpu.memory_space<vmem>>, vector<64x1xf32>
      tpu.vector_store %arg8[%c0_33, %c0_34], %73 {strides = array<i32>} : memref<64x1xf32, #tpu.memory_space<vmem>>, vector<64x1xf32>,
      %c0_35 = arith.constant 0 : index
      %c0_36 = arith.constant 0 : index
      %75 = vector.load %arg9[%c0_35, %c0_36] : memref<64x1xf32, #tpu.memory_space<vmem>>, vector<64x1xf32>
      %76 = arith.minimumf %75, %65 : vector<64x1xf32>
      %c0_37 = arith.constant 0 : index
      %c0_38 = arith.constant 0 : index
      %77 = vector.load %arg9[%c0_37, %c0_38] : memref<64x1xf32, #tpu.memory_space<vmem>>, vector<64x1xf32>
      tpu.vector_store %arg9[%c0_37, %c0_38], %76 {strides = array<i32>} : memref<64x1xf32, #tpu.memory_space<vmem>>, vector<64x1xf32>,
      %c0_39 = arith.constant 0 : index
      %c0_40 = arith.constant 0 : index
      %78 = vector.load %arg10[%c0_39, %c0_40] : memref<64x1xf32, #tpu.memory_space<vmem>>, vector<64x1xf32>
      %79 = arith.maximumf %78, %71 : vector<64x1xf32>
      %c0_41 = arith.constant 0 : index
      %c0_42 = arith.constant 0 : index
      %80 = vector.load %arg10[%c0_41, %c0_42] : memref<64x1xf32, #tpu.memory_space<vmem>>, vector<64x1xf32>
      tpu.vector_store %arg10[%c0_41, %c0_42], %79 {strides = array<i32>} : memref<64x1xf32, #tpu.memory_space<vmem>>, vector<64x1xf32>,
    } else {
    }
    return
  }
  func.func @transform_0(%arg0: i32, %arg1: i32) -> (i32, i32) {
    %c0_i32 = arith.constant 0 : i32
    %c0_i32_0 = arith.constant 0 : i32
    return %arg0, %c0_i32 : i32, i32
  }
  func.func @transform_1(%arg0: i32, %arg1: i32) -> (i32, i32) {
    %c0_i32 = arith.constant 0 : i32
    %c0_i32_0 = arith.constant 0 : i32
    return %arg1, %c0_i32 : i32, i32
  }
  func.func @transform_2(%arg0: i32, %arg1: i32) -> (i32, i32) {
    %c0_i32 = arith.constant 0 : i32
    %c0_i32_0 = arith.constant 0 : i32
    return %arg0, %c0_i32 : i32, i32
  }
  func.func @transform_3(%arg0: i32, %arg1: i32) -> (i32, i32) {
    %c0_i32 = arith.constant 0 : i32
    %c0_i32_0 = arith.constant 0 : i32
    return %c0_i32, %arg1 : i32, i32
  }
  func.func @transform_4(%arg0: i32, %arg1: i32) -> (i32, i32) {
    %c0_i32 = arith.constant 0 : i32
    %c0_i32_0 = arith.constant 0 : i32
    return %arg0, %c0_i32 : i32, i32
  }
  func.func @transform_5(%arg0: i32, %arg1: i32) -> (i32, i32) {
    %c0_i32 = arith.constant 0 : i32
    %c0_i32_0 = arith.constant 0 : i32
    return %c0_i32, %arg1 : i32, i32
  }
  func.func @transform_6(%arg0: i32, %arg1: i32) -> (i32, i32) {
    %c0_i32 = arith.constant 0 : i32
    %c0_i32_0 = arith.constant 0 : i32
    return %arg0, %c0_i32 : i32, i32
  }
  func.func @transform_7(%arg0: i32, %arg1: i32) -> (i32, i32) {
    %c0_i32 = arith.constant 0 : i32
    %c0_i32_0 = arith.constant 0 : i32
    return %arg0, %c0_i32 : i32, i32
  }
  func.func @transform_8(%arg0: i32, %arg1: i32) -> (i32, i32) {
    %c0_i32 = arith.constant 0 : i32
    %c0_i32_0 = arith.constant 0 : i32
    return %arg0, %c0_i32 : i32, i32
  }
}

</mosaic_0001>

<bundles_post_ra>
// kernel: tpu_custom_call.1
= control target key start
LH: loop header
LB: loop body
LE: loop exit
PB: predicated region body
PF: predicated region fallthrough
CT: control target
= control target key end

     0   :  { %s1683_s27 = smov 0   ;;  %s1685_s28 = smov 0   ;;  %s2403_s0 = inlined_call_operand.vmem [shape: f32[256,32], index: 0, kind: input, shape index: {}]   ;;  %s2404_s1 = inlined_call_operand.vmem [shape: f32[256,32], index: 1, kind: input, shape index: {}]   ;;  %s2405_s2 = inlined_call_operand.vmem [shape: f32[256,1], index: 2, kind: input, shape index: {}]   ;;  %s2406_s3 = inlined_call_operand.vmem [shape: f32[1,256], index: 3, kind: input, shape index: {}]   ;;  %s2407_s4 = inlined_call_operand.vmem [shape: s32[256,1], index: 4, kind: input, shape index: {}]   ;;  %s2408_s5 = inlined_call_operand.vmem [shape: s32[1,256], index: 5, kind: input, shape index: {}]   ;;  %s2409_s6 = inlined_call_operand.vmem [shape: f32[256,1], index: 6, kind: output, shape index: {0}]   ;;  %s2410_s7 = inlined_call_operand.vmem [shape: f32[256,1], index: 7, kind: output, shape index: {1}]   ;;  %s2411_s8 = inlined_call_operand.vmem [shape: f32[256,1], index: 8, kind: output, shape index: {2}]  }
   0x1   :  { %s1687_s29 = smov 0   ;;  %s1689_s30 = smov 0  }
   0x2   :  { %s1691_s9 = smov 0  }
   0x3 LB: > { %s28_s10 = sadd.s32 1, %s1624_s29  ;;  %s31_s11 = sadd.s32 1, %s1628_s30  ;;  %s1632_s9 = sphi %s1691_s9, %s19_s9   ;;  %s1628_s30 = sphi %s1689_s30, %s2462_s30   ;;  %s1624_s29 = sphi %s1687_s29, %s2461_s29   ;;  %s1620_s28 = sphi %s1685_s28, %s2460_s28   ;;  %s1616_s27 = sphi %s1683_s27, %s2459_s27  }
   0x4   : > { %p29_p0 = scmp.ge.s32.totalorder %s28_s10, 2  ;;  %p1364_p1 = scmp.ge.s32.totalorder %s1632_s9, 1 }
   0x5   : > { %p329_p2 = scmp.lt.s32.totalorder %s1632_s9, 9 }
   0x6   : > { %s2464_s10 = smov (%p29_p0, %s28_s10), 0  ;;  %s2466_s11 = smov (!%p29_p0, %s31_s11), %s1628_s30 }
   0x7   : > { %p330_p3 = pnand %p1364_p1, %p329_p2  ;;  %p33_p4 = scmp.ge.s32.totalorder %s2466_s11, 4 }
   0x8   : > { %s1367_s12 = sshll.u32 (!%p330_p3), %s1616_s27, 4  ;;  %s1365_s13 = sshll.u32 (!%p330_p3), %s1620_s28, 3  ;;  %v1634_v0 = vmov (!%p330_p3), 0   ;;  %vm466_vm0 = vcmask (!%p330_p3), 261120  }
   0x9   : > { %s2468_s11 = smov (%p33_p4, %s2466_s11), 0  ;;  %333 = sbr.rel (%p330_p3) target bundleno = 715 (0x2cb), region = 44 }
   0xa   : > { %p401_p5 = scmp.lt.s32.totalorder (!%p330_p3), %s1367_s12, 31  ;;  %p395_p6 = scmp.lt.s32.totalorder (!%p330_p3), %s1365_s13, 31  ;;  %1593 = vset.pattern.permute.xlu1 (!%p330_p3), %v1634_v0  ;;  %1592 = vset.pattern.permute.xlu0 (!%p330_p3), %v1634_v0  ;;  %vm1726_vm1 = vmpackc.low (!%p330_p3), %vm466_vm0, %vm466_vm0 }
   0xb   : > { %p412_p7 = scmp.lt.s32.totalorder (!%p330_p3), %s1616_s27, 1  ;;  %p1405_p8 = scmp.ne.s32.totalorder (!%p330_p3), %s1616_s27, 0 }
  0x10   : > { %s2470_s12 = smov (!%p401_p5, %s1367_s12), 31  ;;  %s2472_s13 = smov (!%p395_p6, %s1365_s13), 31 }
  0x11   : > { %s1368_s14 = sshll.u32 %s2470_s12, 3  ;;  %s1730_s18 = sshll.u32 %s2472_s13, 3  ;;  %vm780_vm10 = vcmask (!%p1405_p8), 7168  }
  0x12   : > { %s1722_s17 = scalar_lea.vmem %s2404_s1, %s1368_s14  ;;  %s1739_s21 = scalar_lea.vmem %s2409_s6, %s1730_s18 }
  0x13   : > { %v450_v2 = vld [vmem:[%s1722_s17] sm:$0xff]  ;;  %v451_v3 = vld [vmem:[%s1722_s17 + $0x8] sm:$0xff]  ;;  %v452_v4 = vld [vmem:[%s1722_s17 + $0x10] sm:$0xff]  ;;  %s1746_s24 = scalar_lea.vmem %s2410_s7, %s1730_s18  ;;  %s1752_s12 = scalar_lea.vmem %s2411_s8, %s1730_s18 }
  0x14   : > { %v1484_v5 = vpack.c.bf16 %v451_v3, %v450_v2  ;;  %v453_v6 = vld [vmem:[%s1722_s17 + $0x18] sm:$0xff]  ;;  %s1758_s15 = scalar_lea.vmem %s2403_s0, %s1730_s18  ;;  %s410_s20 = scalar_lea.vmem %s2405_s2, %s1730_s18  ;;  %v454_v10 = vld [vmem:[%s1722_s17 + $0x20] sm:$0xff]  ;;  %v455_v11 = vld [vmem:[%s1722_s17 + $0x28] sm:$0xff] }
  0x15   : > { %v1490_v7 = vpack.c.bf16 %v453_v6, %v452_v4  ;;  %v442_v8 = vld [vmem:[%s1758_s15] sm:$0xff]  ;;  %v646_v12 = vld [vmem:[%s410_s20 + $0x10] sm:$0xff]  ;;  %v1496_v14 = vpack.c.bf16 %v455_v11, %v454_v10  ;;  %v647_v15 = vld [vmem:[%s410_s20 + $0x18] sm:$0xff]  ;;  %s419_s25 = scalar_lea.vmem %s2407_s4, %s1730_s18 }
  0x16   : > { %1486 = vmatprep.subr.msk.bf16.mxu0 %vm1726_vm1, %v1484_v5  ;;  %1532 = vmatprep.subr.msk.bf16.mxu1 %vm1726_vm1, %v1484_v5  ;;  %v446_v9 = vld [vmem:[%s1758_s15 + $0x20] sm:$0xff]  ;;  %v645_v16 = vld [vmem:[%s410_s20 + $0x8] sm:$0xff]  ;;  %v456_v17 = vld [vmem:[%s1722_s17 + $0x30] sm:$0xff] }
  0x17   : > { %1489 = vmatpush3.bf16.xpose.msk.msra.mxu0 %vm1726_vm1, %v1484_v5  ;;  %1540 = vmatpush3.bf16.xpose.msk.msra.mxu1 %vm1726_vm1, %v1484_v5  ;;  %v644_v13 = vld [vmem:[%s410_s20] sm:$0xff]  ;;  %v457_v18 = vld [vmem:[%s1722_s17 + $0x38] sm:$0xff]  ;;  %v649_v19 = vld [vmem:[%s410_s20 + $0x28] sm:$0xff] }
  0x18   : > { %1492 = vmatprep.subr.msk.bf16.mxu0 %vm1726_vm1, %v1490_v7  ;;  %1533 = vmatprep.subr.msk.bf16.mxu1 %vm1726_vm1, %v1490_v7  ;;  %v648_v20 = vld [vmem:[%s410_s20 + $0x20] sm:$0xff]  ;;  %v1502_v21 = vpack.c.bf16 %v457_v18, %v456_v17  ;;  %v651_v22 = vld [vmem:[%s410_s20 + $0x38] sm:$0xff]  ;;  %v650_v23 = vld [vmem:[%s410_s20 + $0x30] sm:$0xff] }
  0x19   : > { %1472 = vmatprep.mubr.msk.f32.mxu0 %vm466_vm0, %v442_v8  ;;  %1478 = vmatprep.mubr.msk.f32.mxu1 %vm466_vm0, %v446_v9  ;;  %v458_v24 = vld [vmem:[%s1722_s17 + $0x40] sm:$0xff]  ;;  %v459_v25 = vld [vmem:[%s1722_s17 + $0x48] sm:$0xff]  ;;  %v734_v29 = vld [vmem:[%s419_s25 + $0x18] sm:$0xff] }
  0x1a   : > { %665 = vperm.xlu1 %1593, %v646_v12   ;;  %655 = vperm.xlu0 %1592, %v644_v13   ;;  %v732_v26 = vld [vmem:[%s419_s25 + $0x8] sm:$0xff]  ;;  %v731_v27 = vld [vmem:[%s419_s25] sm:$0xff]  ;;  %v1508_v28 = vpack.c.bf16 %v459_v25, %v458_v24  ;;  %v733_v30 = vld [vmem:[%s419_s25 + $0x10] sm:$0xff] }
  0x1b   : > { %v460_v31 = vld [vmem:[%s1722_s17 + $0x50] sm:$0xff]  ;;  %v461_v32 = vld [vmem:[%s1722_s17 + $0x58] sm:$0xff]  ;;  %v736_v33 = vld [vmem:[%s419_s25 + $0x28] sm:$0xff] }
  0x1c   : > { %v735_v34 = vld [vmem:[%s419_s25 + $0x20] sm:$0xff]  ;;  %v1514_v35 = vpack.c.bf16 %v461_v32, %v460_v31  ;;  %v738_v36 = vld [vmem:[%s419_s25 + $0x38] sm:$0xff]  ;;  %v737_v37 = vld [vmem:[%s419_s25 + $0x30] sm:$0xff] }
  0x1d   : > { %v462_v38 = vld [vmem:[%s1722_s17 + $0x60] sm:$0xff]  ;;  %v463_v39 = vld [vmem:[%s1722_s17 + $0x68] sm:$0xff]  ;;  %v464_v41 = vld [vmem:[%s1722_s17 + $0x70] sm:$0xff] }
  0x1e   : > { %670 = vperm.xlu1 %1593, %v647_v15   ;;  %660 = vperm.xlu0 %1592, %v645_v16   ;;  %v1520_v40 = vpack.c.bf16 %v463_v39, %v462_v38  ;;  %v465_v42 = vld [vmem:[%s1722_s17 + $0x78] sm:$0xff]  ;;  %v443_v44 = vld [vmem:[%s1758_s15 + $0x8] sm:$0xff]  ;;  %v444_v46 = vld [vmem:[%s1758_s15 + $0x10] sm:$0xff]  ;;  %s413_s17 = scalar_select %p412_p7, %s1616_s27, 1 }
  0x1f   : > { %1495 = vmatpush3.bf16.xpose.msk.msra.mxu0 %vm1726_vm1, %v1490_v7  ;;  %1541 = vmatpush3.bf16.xpose.msk.msra.mxu1 %vm1726_vm1, %v1490_v7  ;;  %v1526_v43 = vpack.c.bf16 %v465_v42, %v464_v41  ;;  %v447_v45 = vld [vmem:[%s1758_s15 + $0x28] sm:$0xff]  ;;  %v448_v47 = vld [vmem:[%s1758_s15 + $0x30] sm:$0xff]  ;;  %v445_v48 = vld [vmem:[%s1758_s15 + $0x18] sm:$0xff] }
  0x20   : > { %1498 = vmatprep.subr.msk.bf16.mxu0 %vm1726_vm1, %v1496_v14  ;;  %1534 = vmatprep.subr.msk.bf16.mxu1 %vm1726_vm1, %v1496_v14  ;;  %v449_v49 = vld [vmem:[%s1758_s15 + $0x38] sm:$0xff]  ;;  %s423_s13 = scalar_lea.vmem %s2408_s5, %s413_s17  ;;  %s414_s16 = scalar_lea.vmem %s2406_s3, %s413_s17 }
  0x21   : > { %v1865_v58 = vld [vmem:[%s423_s13] ss:$0 sm:$0xff] }
  0x22   : > { %680 = vperm.xlu1 %1593, %v649_v19   ;;  %675 = vperm.xlu0 %1592, %v648_v20   ;;  %v1403_v3 = vld [vmem:[%s414_s16] ss:$0 sm:$0xff] }
  0x26   : > { %690 = vperm.xlu1 %1593, %v651_v22   ;;  %685 = vperm.xlu0 %1592, %v650_v23  }
  0x27   : > { %1501 = vmatpush3.bf16.xpose.msk.msra.mxu0 %vm1726_vm1, %v1496_v14  ;;  %1542 = vmatpush3.bf16.xpose.msk.msra.mxu1 %vm1726_vm1, %v1496_v14 }
  0x28   : > { %1504 = vmatprep.subr.msk.bf16.mxu0 %vm1726_vm1, %v1502_v21  ;;  %1535 = vmatprep.subr.msk.bf16.mxu1 %vm1726_vm1, %v1502_v21 }
  0x2a   : > { %744 = vperm.xlu1 %1593, %v732_v26   ;;  %741 = vperm.xlu0 %1592, %v731_v27  }
  0x2e   : > { %750 = vperm.xlu1 %1593, %v734_v29   ;;  %747 = vperm.xlu0 %1592, %v733_v30  }
  0x2f   : > { %1507 = vmatpush3.bf16.xpose.msk.msra.mxu0 %vm1726_vm1, %v1502_v21  ;;  %1543 = vmatpush3.bf16.xpose.msk.msra.mxu1 %vm1726_vm1, %v1502_v21 }
  0x30   : > { %1510 = vmatprep.subr.msk.bf16.mxu0 %vm1726_vm1, %v1508_v28  ;;  %1536 = vmatprep.subr.msk.bf16.mxu1 %vm1726_vm1, %v1508_v28 }
  0x32   : > { %756 = vperm.xlu1 %1593, %v736_v33   ;;  %753 = vperm.xlu0 %1592, %v735_v34  }
  0x36   : > { %762 = vperm.xlu1 %1593, %v738_v36   ;;  %759 = vperm.xlu0 %1592, %v737_v37  }
  0x37   : > { %1513 = vmatpush3.bf16.xpose.msk.msra.mxu0 %vm1726_vm1, %v1508_v28  ;;  %1544 = vmatpush3.bf16.xpose.msk.msra.mxu1 %vm1726_vm1, %v1508_v28 }
  0x38   : > { %1516 = vmatprep.subr.msk.bf16.mxu0 %vm1726_vm1, %v1514_v35  ;;  %1537 = vmatprep.subr.msk.bf16.mxu1 %vm1726_vm1, %v1514_v35 }
  0x3f   : > { %1519 = vmatpush3.bf16.xpose.msk.msra.mxu0 %vm1726_vm1, %v1514_v35  ;;  %1545 = vmatpush3.bf16.xpose.msk.msra.mxu1 %vm1726_vm1, %v1514_v35 }
  0x40   : > { %1522 = vmatprep.subr.msk.bf16.mxu0 %vm1726_vm1, %v1520_v40  ;;  %1538 = vmatprep.subr.msk.bf16.mxu1 %vm1726_vm1, %v1520_v40 }
  0x47   : > { %1525 = vmatpush3.bf16.xpose.msk.msra.mxu0 %vm1726_vm1, %v1520_v40  ;;  %1546 = vmatpush3.bf16.xpose.msk.msra.mxu1 %vm1726_vm1, %v1520_v40 }
  0x48   : > { %1528 = vmatprep.subr.msk.bf16.mxu0 %vm1726_vm1, %v1526_v43  ;;  %1539 = vmatprep.subr.msk.bf16.mxu1 %vm1726_vm1, %v1526_v43 }
  0x4f   : > { %1531 = vmatpush3.bf16.xpose.msk.msra.mxu0 %vm1726_vm1, %v1526_v43  ;;  %1547 = vmatpush3.bf16.xpose.msk.msra.mxu1 %vm1726_vm1, %v1526_v43 }
  0x56   : > { %1473 = vmatmul.mubr.msk.f32.vlgmr.msra.gmra.mrb[0].mxu0 %vm466_vm0, %v443_v44  ;;  %1479 = vmatmul.mubr.msk.f32.vlgmr.msra.gmra.mrb[0].mxu1 %vm466_vm0, %v447_v45  ;;  %v1635_v44 = vmov (!%p1405_p8), 0.0   ;;  %v1636_v45 = vmov (!%p1405_p8), 8.5e+37  }
  0x57   : > { %1475 = vmatprep.mubr.msk.f32.mxu0 %vm466_vm0, %v444_v46  ;;  %1481 = vmatprep.mubr.msk.f32.mxu1 %vm466_vm0, %v448_v47  ;;  %781 = vst.msk [vmem:[%s1739_s21] sm:$0xff] (!%p1405_p8), %vm780_vm10, %v1635_v44  ;;  %782 = vst.msk [vmem:[%s1739_s21 + $0x8] sm:$0xff] (!%p1405_p8), %vm780_vm10, %v1635_v44 }
  0x58   : > { %783 = vst.msk [vmem:[%s1739_s21 + $0x10] sm:$0xff] (!%p1405_p8), %vm780_vm10, %v1635_v44  ;;  %784 = vst.msk [vmem:[%s1739_s21 + $0x18] sm:$0xff] (!%p1405_p8), %vm780_vm10, %v1635_v44 }
  0x59   : > { %785 = vst.msk [vmem:[%s1739_s21 + $0x20] sm:$0xff] (!%p1405_p8), %vm780_vm10, %v1635_v44  ;;  %786 = vst.msk [vmem:[%s1739_s21 + $0x28] sm:$0xff] (!%p1405_p8), %vm780_vm10, %v1635_v44 }
  0x5a   : > { %1476 = vmatmul.mubr.msk.f32.gmra.mrb[2].mxu0 %vm466_vm0, %v445_v48  ;;  %1482 = vmatmul.mubr.msk.f32.gmra.mrb[2].mxu1 %vm466_vm0, %v449_v49  ;;  %787 = vst.msk [vmem:[%s1739_s21 + $0x30] sm:$0xff] (!%p1405_p8), %vm780_vm10, %v1635_v44  ;;  %788 = vst.msk [vmem:[%s1739_s21 + $0x38] sm:$0xff] (!%p1405_p8), %vm780_vm10, %v1635_v44 }
  0x5b   : > { %797 = vst.msk [vmem:[%s1752_s12] sm:$0xff] (!%p1405_p8), %vm780_vm10, %v1635_v44  ;;  %798 = vst.msk [vmem:[%s1752_s12 + $0x8] sm:$0xff] (!%p1405_p8), %vm780_vm10, %v1635_v44 }
  0x5c   : > { %799 = vst.msk [vmem:[%s1752_s12 + $0x10] sm:$0xff] (!%p1405_p8), %vm780_vm10, %v1635_v44  ;;  %800 = vst.msk [vmem:[%s1752_s12 + $0x18] sm:$0xff] (!%p1405_p8), %vm780_vm10, %v1635_v44 }
  0x5d   : > { %801 = vst.msk [vmem:[%s1752_s12 + $0x20] sm:$0xff] (!%p1405_p8), %vm780_vm10, %v1635_v44  ;;  %802 = vst.msk [vmem:[%s1752_s12 + $0x28] sm:$0xff] (!%p1405_p8), %vm780_vm10, %v1635_v44 }
  0x5e   : > { %803 = vst.msk [vmem:[%s1752_s12 + $0x30] sm:$0xff] (!%p1405_p8), %vm780_vm10, %v1635_v44  ;;  %804 = vst.msk [vmem:[%s1752_s12 + $0x38] sm:$0xff] (!%p1405_p8), %vm780_vm10, %v1635_v44 }
  0x5f   : > { %789 = vst.msk [vmem:[%s1746_s24] sm:$0xff] (!%p1405_p8), %vm780_vm10, %v1636_v45  ;;  %790 = vst.msk [vmem:[%s1746_s24 + $0x8] sm:$0xff] (!%p1405_p8), %vm780_vm10, %v1636_v45 }
  0x60   : > { %791 = vst.msk [vmem:[%s1746_s24 + $0x10] sm:$0xff] (!%p1405_p8), %vm780_vm10, %v1636_v45  ;;  %792 = vst.msk [vmem:[%s1746_s24 + $0x18] sm:$0xff] (!%p1405_p8), %vm780_vm10, %v1636_v45 }
  0x61   : > { %793 = vst.msk [vmem:[%s1746_s24 + $0x20] sm:$0xff] (!%p1405_p8), %vm780_vm10, %v1636_v45  ;;  %794 = vst.msk [vmem:[%s1746_s24 + $0x28] sm:$0xff] (!%p1405_p8), %vm780_vm10, %v1636_v45 }
  0x62   : > { %795 = vst.msk [vmem:[%s1746_s24 + $0x30] sm:$0xff] (!%p1405_p8), %vm780_vm10, %v1636_v45  ;;  %796 = vst.msk [vmem:[%s1746_s24 + $0x38] sm:$0xff] (!%p1405_p8), %vm780_vm10, %v1636_v45 }
  0x99   : > { %v666_v50 = vpop.permute.xlu1 %665  ;;  %v656_v51 = vpop.permute.xlu0 %655 }
  0x9a   : > { %v699_v12 = vadd.f32 %v1403_v3, %v656_v51  ;;  %v701_v16 = vadd.f32 %v1403_v3, %v666_v50 }
  0x9d   : > { %v671_v52 = vpop.permute.xlu1 %670  ;;  %v661_v53 = vpop.permute.xlu0 %660 }
  0x9e   : > { %v700_v6 = vadd.f32 %v1403_v3, %v661_v53  ;;  %v702_v17 = vadd.f32 %v1403_v3, %v671_v52 }
  0xa1   : > { %v681_v54 = vpop.permute.xlu1 %680  ;;  %v676_v55 = vpop.permute.xlu0 %675 }
  0xa2   : > { %v704_v7 = vadd.f32 %v1403_v3, %v681_v54  ;;  %v703_v13 = vadd.f32 %v1403_v3, %v676_v55 }
  0xa5   : > { %v691_v56 = vpop.permute.xlu1 %690  ;;  %v686_v57 = vpop.permute.xlu0 %685 }
  0xa6   : > { %v706_v20 = vadd.f32 %v1403_v3, %v691_v56  ;;  %v705_v21 = vadd.f32 %v1403_v3, %v686_v57 }
  0xa9   : > { %v1867_v59 = vpop.permute.xlu1 %744  ;;  %v1869_v60 = vpop.permute.xlu0 %741 }
  0xaa   : > { %vm2412_vm2 = vcmp.eq.s32.totalorder %v1867_v59, %v1865_v58  ;;  %vm2414_vm3 = vcmp.eq.s32.totalorder %v1869_v60, %v1865_v58 }
  0xad   : > { %v1875_v61 = vpop.permute.xlu1 %750  ;;  %v1877_v62 = vpop.permute.xlu0 %747 }
  0xae   : > { %vm2413_vm4 = vcmp.eq.s32.totalorder %v1875_v61, %v1865_v58  ;;  %vm2416_vm5 = vcmp.eq.s32.totalorder %v1877_v62, %v1865_v58 }
  0xb1   : > { %v1883_v63 = vpop.permute.xlu1 %756  ;;  %v1885_v0 = vpop.permute.xlu0 %753 }
  0xb2   : > { %vm2415_vm6 = vcmp.eq.s32.totalorder %v1883_v63, %v1865_v58  ;;  %vm2417_vm7 = vcmp.eq.s32.totalorder %v1885_v0, %v1865_v58 }
  0xb5   : > { %v1891_v1 = vpop.permute.xlu1 %762  ;;  %v1893_v2 = vpop.permute.xlu0 %759 }
 0x129   : > { %v1474_v4 = vpop.f32.mrb[0].mxu0  ;;  %v1480_v5 = vpop.f32.mrb[0].mxu1 }
 0x12a   : > { %v708_v8 = vmul.f32 2.0, %v1474_v4  ;;  %v712_v9 = vmul.f32 2.0, %v1480_v5  ;;  %v605_v10 = vpop.f32.mrb[1].mxu0  ;;  %v625_v11 = vpop.f32.mrb[1].mxu1 }
 0x12b   : > { %v707_v14 = vmul.f32 2.0, %v605_v10  ;;  %v711_v15 = vmul.f32 2.0, %v625_v11 }
 0x12c   : > { %v716_v18 = vsub.f32 %v700_v6, %v708_v8  ;;  %v720_v19 = vsub.f32 %v704_v7, %v712_v9 }
 0x12d   : > { %v715_v22 = vsub.f32 %v699_v12, %v707_v14  ;;  %v719_v23 = vsub.f32 %v703_v13, %v711_v15  ;;  %v1477_v24 = vpop.f32.mrb[2].mxu0  ;;  %v1483_v25 = vpop.f32.mrb[2].mxu1  ;;  %779 = sbr.rel (%p1405_p8) target bundleno = 308 (0x134), region = 48 }
 0x12e   : > { %v1902_v26 = vmax.f32 %v716_v18, 0.0  ;;  %v1904_v27 = vmax.f32 %v720_v19, 0.0  ;;  %v710_v28 = vmul.f32 2.0, %v1477_v24  ;;  %v714_v29 = vmul.f32 2.0, %v1483_v25  ;;  %v615_v30 = vpop.f32.mrb[3].mxu0  ;;  %v635_v31 = vpop.f32.mrb[3].mxu1 }
 0x12f   : > { %v1906_v32 = vmax.f32 %v715_v22, 0.0  ;;  %v1908_v33 = vmax.f32 %v719_v23, 0.0  ;;  %v709_v34 = vmul.f32 2.0, %v615_v30  ;;  %v713_v35 = vmul.f32 2.0, %v635_v31 }
 0x130   : > { %v718_v36 = vsub.f32 %v702_v17, %v710_v28  ;;  %v722_v37 = vsub.f32 %v706_v20, %v714_v29 }
 0x131   : > { %v717_v38 = vsub.f32 %v701_v16, %v709_v34  ;;  %v721_v39 = vsub.f32 %v705_v21, %v713_v35 }
 0x132   : > { %v1910_v40 = vmax.f32 %v718_v36, 0.0  ;;  %v1912_v41 = vmax.f32 %v722_v37, 0.0 }
 0x133   : > { %v1914_v42 = vmax.f32 %v717_v38, 0.0  ;;  %v1916_v43 = vmax.f32 %v721_v39, 0.0 }
 0x134 PF: > { %s1412_s19 = sshll.u32 %s1616_s27, 7  ;;  %s1407_s20 = sshll.u32 %s1620_s28, 6 }
 0x135   : > { %s1413_s22 = sadd.s32 128, %s1412_s19  ;;  %s1415_s23 = sadd.s32 64, %s1407_s20 }
 0x136   : > { %p809_p9 = scmp.lt.s32.totalorder %s1407_s20, %s1413_s22  ;;  %p813_p10 = scmp.lt.s32.totalorder %s1412_s19, %s1415_s23 }
 0x137   : > { %p1969_p11 = scmp.gt.s32.totalorder %s1413_s22, 144 }
 0x138   : > { %p814_p12 = pnand %p813_p10, %p809_p9 }
 0x13a   : > { %p1973_p13 = pneg %p814_p12 }
 0x13c   : > { %p816_p0 = por %p1973_p13, %p1969_p11 }
 0x13d   : > { %v820_v46 = vlaneseq (%p816_p0)  ;;  %v829_v47 = vstv (%p816_p0), %s1407_s20  ;;  %v840_v48 = vstv (%p816_p0), %s1412_s19  ;;  %v964_v14 = vld [vmem:[%s1739_s21 + $0x38] sm:$0xff] (%p816_p0)  ;;  %v983_v20 = vld [vmem:[%s1746_s24 + $0x8] sm:$0xff] (%p816_p0) }
 0x13e   : > { %819 = sbr.rel (!%p816_p0) target bundleno = 524 (0x20c), region = 52 }
 0x13f   : > { %v821_v49 = vshrl.u32 (%p816_p0), %v820_v46, 7  ;;  %v839_v50 = vand.u32 (%p816_p0), 127, %v820_v46 }
 0x141   : > { %v830_v51 = vadd.s32 (%p816_p0), %v829_v47, %v821_v49  ;;  %v1986_v52 = vadd.s32 (%p816_p0), %v840_v48, %v839_v50  ;;  %v823_v53 = vadd.s32 (%p816_p0), 16, %v821_v49  ;;  %v824_v54 = vadd.s32 (%p816_p0), 24, %v821_v49 }
 0x142   : > { %v822_v55 = vadd.s32 (%p816_p0), 8, %v821_v49  ;;  %v826_v56 = vadd.s32 (%p816_p0), 40, %v821_v49  ;;  %v825_v57 = vadd.s32 (%p816_p0), 32, %v821_v49  ;;  %v828_v7 = vadd.s32 (%p816_p0), 56, %v821_v49 }
 0x143   : > { %vm842_vm11 = vcmp.lt.s32.totalorder (%p816_p0), %v1986_v52, 144  ;;  %vm843_vm12 = vcmp.ne.s32.totalorder (%p816_p0), %v830_v51, %v1986_v52  ;;  %v832_v3 = vadd.s32 (%p816_p0), %v829_v47, %v823_v53  ;;  %v833_v4 = vadd.s32 (%p816_p0), %v829_v47, %v824_v54  ;;  %v957_v51 = vld [vmem:[%s1739_s21] sm:$0xff] (%p816_p0)  ;;  %v959_v54 = vld [vmem:[%s1739_s21 + $0x10] sm:$0xff] (%p816_p0) }
 0x144   : > { %vm851_vm13 = vmand (%p816_p0), %vm2414_vm3, %vm843_vm12  ;;  %v831_v5 = vadd.s32 (%p816_p0), %v829_v47, %v822_v55  ;;  %v835_v6 = vadd.s32 (%p816_p0), %v829_v47, %v826_v56  ;;  %v834_v9 = vadd.s32 (%p816_p0), %v829_v47, %v825_v57  ;;  %v827_v10 = vadd.s32 (%p816_p0), 48, %v821_v49 }
 0x145   : > { %vm861_vm14 = vmand %vm851_vm13, %vm842_vm11  ;;  %vm845_vm15 = vcmp.ne.s32.totalorder %v832_v3, %v1986_v52  ;;  %vm846_vm0 = vcmp.ne.s32.totalorder %v833_v4, %v1986_v52  ;;  %v837_v13 = vadd.s32 %v829_v47, %v828_v7  ;;  %v934_v39 = vsel %vm842_vm11, %v1902_v26, 0.0  ;;  %v960_v3 = vld [vmem:[%s1739_s21 + $0x18] sm:$0xff] }
 0x146   : > { %v885_v8 = vsel %vm861_vm14, %v1906_v32, 0.0  ;;  %vm853_vm1 = vmand %vm2416_vm5, %vm845_vm15  ;;  %vm844_vm12 = vcmp.ne.s32.totalorder %v831_v5, %v1986_v52  ;;  %vm848_vm15 = vcmp.ne.s32.totalorder %v835_v6, %v1986_v52  ;;  %vm847_vm8 = vcmp.ne.s32.totalorder %v834_v9, %v1986_v52  ;;  %v961_v9 = vld [vmem:[%s1739_s21 + $0x20] sm:$0xff] }
 0x147   : > { %893 = vmax.xlane.f32.xlu0 %v885_v8  ;;  %vm863_vm10 = vmand %vm853_vm1, %vm842_vm11  ;;  %vm2418_vm1 = vmmov 1   ;;  %v836_v17 = vadd.s32 %v829_v47, %v827_v10  ;;  %v933_v44 = vsel %vm842_vm11, %v1906_v32, 0.0  ;;  %v936_v45 = vsel %vm842_vm11, %v1910_v40, 0.0  ;;  %v962_v8 = vld [vmem:[%s1739_s21 + $0x28] sm:$0xff] }
 0x148   : > { %v887_v11 = vsel %vm863_vm10, %v1914_v42, 0.0  ;;  %vm854_vm13 = vmand %vm2413_vm4, %vm846_vm0  ;;  %v935_v46 = vsel %vm842_vm11, %v1914_v42, 0.0  ;;  %v938_v47 = vsel %vm842_vm11, %v1904_v27, 0.0  ;;  %v937_v48 = vsel %vm842_vm11, %v1908_v33, 0.0 }
 0x149   : > { %897 = vmax.xlane.f32.xlu1 %v887_v11  ;;  %vm2010_vm14 = vmand %vm854_vm13, %vm842_vm11  ;;  %v940_v49 = vsel %vm842_vm11, %v1912_v41, 0.0  ;;  %v939_v50 = vsel %vm842_vm11, %v1916_v43, 0.0 }
 0x14a   : > { %vm2019_vm10 = vmxor %vm2412_vm2, %vm2418_vm1  ;;  %v888_v15 = vsel %vm2010_vm14, %v1910_v40, 0.0 }
 0x14b   : > { %vm852_vm0 = vmand %vm2412_vm2, %vm844_vm12 }
 0x14c   : > { %vm2033_vm13 = vmxor %vm2414_vm3, %vm2418_vm1 }
 0x14d   : > { %vm862_vm9 = vmand %vm852_vm0, %vm842_vm11  ;;  %899 = vmax.xlane.f32.xlu1 %v888_v15  ;;  %v963_v15 = vld [vmem:[%s1739_s21 + $0x30] sm:$0xff] }
 0x14e   : > { %vm2044_vm14 = vmxor %vm2413_vm4, %vm2418_vm1  ;;  %v886_v19 = vsel %vm862_vm9, %v1902_v26, 0.0  ;;  %vm850_vm4 = vcmp.ne.s32.totalorder %v837_v13, %v1986_v52 }
 0x14f   : > { %vm856_vm12 = vmand %vm2415_vm6, %vm848_vm15  ;;  %895 = vmax.xlane.f32.xlu0 %v886_v19 }
 0x150   : > { %vm2056_vm0 = vmxor %vm2416_vm5, %vm2418_vm1  ;;  %vm2439_vm5 = vcmp.eq.s32.totalorder %v1893_v2, %v1865_v58 }
 0x151   : > { %vm866_vm2 = vmand %vm856_vm12, %vm842_vm11  ;;  %vm849_vm12 = vcmp.ne.s32.totalorder %v836_v17, %v1986_v52  ;;  %v958_v52 = vld [vmem:[%s1739_s21 + $0x8] sm:$0xff] }
 0x152   : > { %v890_v21 = vsel %vm866_vm2, %v1904_v27, 0.0  ;;  %vm855_vm9 = vmand %vm2417_vm7, %vm847_vm8  ;;  %vm2438_vm8 = vcmp.eq.s32.totalorder %v1891_v1, %v1865_v58 }
 0x153   : > { %vm2071_vm15 = vmxor %vm2415_vm6, %vm2418_vm1  ;;  %903 = vmax.xlane.f32.xlu1 %v890_v21  ;;  %v982_v21 = vld [vmem:[%s1746_s24] sm:$0xff] }
 0x154   : > { %vm865_vm3 = vmand %vm855_vm9, %vm842_vm11 }
 0x155   : > { %vm2082_vm2 = vmxor %vm2417_vm7, %vm2418_vm1  ;;  %v889_v24 = vsel %vm865_vm3, %v1908_v33, 0.0 }
 0x156   : > { %vm858_vm6 = vmand %vm2438_vm8, %vm850_vm4  ;;  %901 = vmax.xlane.f32.xlu0 %v889_v24 }
 0x157   : > { %vm868_vm9 = vmand %vm858_vm6, %vm842_vm11 }
 0x158   : > { %v892_v25 = vsel %vm868_vm9, %v1912_v41, 0.0  ;;  %vm857_vm7 = vmand %vm2439_vm5, %vm849_vm12 }
 0x159   : > { %vm867_vm1 = vmand %vm857_vm7, %vm842_vm11  ;;  %907 = vmax.xlane.f32.xlu1 %v892_v25 }
 0x15a   : > { %v891_v28 = vsel %vm867_vm1, %v1916_v43, 0.0  ;;  %vm878_vm3 = vmand %vm2019_vm10, %vm842_vm11  ;;  %vm2440_vm10 = vmmov 1  }
 0x15b   : > { %905 = vmax.xlane.f32.xlu0 %v891_v28  ;;  %vm877_vm4 = vmand %vm2033_vm13, %vm842_vm11  ;;  %v910_v29 = vsel %vm878_vm3, %v1902_v26, 8.5e+37  ;;  %v985_v28 = vld [vmem:[%s1746_s24 + $0x18] sm:$0xff] }
 0x15c   : > { %v909_v30 = vsel %vm877_vm4, %v1906_v32, 8.5e+37  ;;  %vm880_vm5 = vmand %vm2044_vm14, %vm842_vm11 }
 0x15d   : > { %vm879_vm6 = vmand %vm2056_vm0, %vm842_vm11  ;;  %919 = vmin.xlane.f32.xlu1 %v910_v29  ;;  %v912_v31 = vsel %vm880_vm5, %v1910_v40, 8.5e+37  ;;  %vm2442_vm0 = vcmp.eq.s32.totalorder %v1893_v2, %v1865_v58  ;;  %v984_v29 = vld [vmem:[%s1746_s24 + $0x10] sm:$0xff] }
 0x15e   : > { %vm882_vm7 = vmand %vm2071_vm15, %vm842_vm11  ;;  %v911_v34 = vsel %vm879_vm6, %v1914_v42, 8.5e+37 }
 0x15f   : > { %917 = vmin.xlane.f32.xlu0 %v909_v30  ;;  %vm881_vm1 = vmand %vm2082_vm2, %vm842_vm11  ;;  %v914_v35 = vsel %vm882_vm7, %v1904_v27, 8.5e+37 }
 0x160   : > { %vm2441_vm13 = vmmov %vm2438_vm8  ;;  %v913_v36 = vsel %vm881_vm1, %v1908_v33, 8.5e+37  ;;  %vm973_vm8 = vcmask 7168  }
 0x161   : > { %vm876_vm14 = vmxor %vm2441_vm13, %vm2440_vm10  ;;  %923 = vmin.xlane.f32.xlu1 %v912_v31 }
 0x162   : > { %vm875_vm12 = vmxor %vm2442_vm0, %vm2440_vm10 }
 0x163   : > { %921 = vmin.xlane.f32.xlu0 %v911_v34  ;;  %vm884_vm15 = vmand %vm876_vm14, %vm842_vm11 }
 0x164   : > { %vm883_vm2 = vmand %vm875_vm12, %vm842_vm11  ;;  %v916_v37 = vsel %vm884_vm15, %v1912_v41, 8.5e+37 }
 0x165   : > { %927 = vmin.xlane.f32.xlu1 %v914_v35  ;;  %v915_v38 = vsel %vm883_vm2, %v1916_v43, 8.5e+37 }
 0x167   : > { %925 = vmin.xlane.f32.xlu0 %v913_v36  ;;  %v987_v36 = vld [vmem:[%s1746_s24 + $0x28] sm:$0xff] }
 0x169   : > { %931 = vmin.xlane.f32.xlu1 %v916_v37  ;;  %v986_v37 = vld [vmem:[%s1746_s24 + $0x20] sm:$0xff] }
 0x16b   : > { %929 = vmin.xlane.f32.xlu0 %v915_v38 }
 0x16d   : > { %943 = vmax.xlane.f32.xlu1 %v934_v39 }
 0x16f   : > { %941 = vmax.xlane.f32.xlu0 %v933_v44 }
 0x171   : > { %947 = vmax.xlane.f32.xlu1 %v936_v45 }
 0x173   : > { %945 = vmax.xlane.f32.xlu0 %v935_v46  ;;  %v989_v46 = vld [vmem:[%s1746_s24 + $0x38] sm:$0xff] }
 0x175   : > { %951 = vmax.xlane.f32.xlu1 %v938_v47  ;;  %v988_v47 = vld [vmem:[%s1746_s24 + $0x30] sm:$0xff] }
 0x177   : > { %949 = vmax.xlane.f32.xlu0 %v937_v48 }
 0x179   : > { %955 = vmax.xlane.f32.xlu1 %v940_v49 }
 0x17b   : > { %953 = vmax.xlane.f32.xlu0 %v939_v50 }
 0x1d4   : > { %v894_v53 = vpop.xlane.xlu0 %893 }
 0x1d5   : > { %v965_v55 = vmax.f32 %v957_v51, %v894_v53  ;;  %v1007_v53 = vld [vmem:[%s1752_s12 + $0x8] sm:$0xff] }
 0x1d6   : > { %v898_v56 = vpop.xlane.xlu1 %897 }
 0x1d7   : > { %974 = vst.msk [vmem:[%s1739_s21] sm:$0xff] %vm973_vm8, %v965_v55  ;;  %v967_v57 = vmax.f32 %v959_v54, %v898_v56  ;;  %v1006_v54 = vld [vmem:[%s1752_s12] sm:$0xff] }
 0x1d9   : > { %976 = vst.msk [vmem:[%s1739_s21 + $0x10] sm:$0xff] %vm973_vm8, %v967_v57 }
 0x1da   : > { %v900_v4 = vpop.xlane.xlu1 %899 }
 0x1db   : > { %v968_v6 = vmax.f32 %v960_v3, %v900_v4  ;;  %v1008_v4 = vld [vmem:[%s1752_s12 + $0x10] sm:$0xff] }
 0x1dc   : > { %v896_v5 = vpop.xlane.xlu0 %895 }
 0x1dd   : > { %v966_v7 = vmax.f32 %v958_v52, %v896_v5  ;;  %977 = vst.msk [vmem:[%s1739_s21 + $0x18] sm:$0xff] %vm973_vm8, %v968_v6  ;;  %v1009_v52 = vld [vmem:[%s1752_s12 + $0x18] sm:$0xff] }
 0x1df   : > { %975 = vst.msk [vmem:[%s1739_s21 + $0x8] sm:$0xff] %vm973_vm8, %v966_v7 }
 0x1e0   : > { %v904_v10 = vpop.xlane.xlu1 %903 }
 0x1e1   : > { %v970_v12 = vmax.f32 %v962_v8, %v904_v10  ;;  %v1010_v10 = vld [vmem:[%s1752_s12 + $0x20] sm:$0xff] }
 0x1e3   : > { %v902_v11 = vpop.xlane.xlu0 %901  ;;  %979 = vst.msk [vmem:[%s1739_s21 + $0x28] sm:$0xff] %vm973_vm8, %v970_v12 }
 0x1e4   : > { %v969_v13 = vmax.f32 %v961_v9, %v902_v11  ;;  %v1011_v9 = vld [vmem:[%s1752_s12 + $0x28] sm:$0xff] }
 0x1e6   : > { %978 = vst.msk [vmem:[%s1739_s21 + $0x20] sm:$0xff] %vm973_vm8, %v969_v13  ;;  %v908_v16 = vpop.xlane.xlu1 %907 }
 0x1e7   : > { %v972_v18 = vmax.f32 %v964_v14, %v908_v16  ;;  %v1012_v16 = vld [vmem:[%s1752_s12 + $0x30] sm:$0xff] }
 0x1e8   : > { %v906_v17 = vpop.xlane.xlu0 %905 }
 0x1e9   : > { %v971_v19 = vmax.f32 %v963_v15, %v906_v17  ;;  %981 = vst.msk [vmem:[%s1739_s21 + $0x38] sm:$0xff] %vm973_vm8, %v972_v18  ;;  %v1013_v15 = vld [vmem:[%s1752_s12 + $0x38] sm:$0xff] }
 0x1ea   : > { %v920_v22 = vpop.xlane.xlu1 %919 }
 0x1eb   : > { %980 = vst.msk [vmem:[%s1739_s21 + $0x30] sm:$0xff] %vm973_vm8, %v971_v19  ;;  %v991_v24 = vmin.f32 %v983_v20, %v920_v22 }
 0x1ec   : > { %v918_v23 = vpop.xlane.xlu0 %917 }
 0x1ed   : > { %v990_v25 = vmin.f32 %v982_v21, %v918_v23  ;;  %999 = vst.msk [vmem:[%s1746_s24 + $0x8] sm:$0xff] %vm973_vm8, %v991_v24 }
 0x1ee   : > { %v924_v30 = vpop.xlane.xlu1 %923 }
 0x1ef   : > { %998 = vst.msk [vmem:[%s1746_s24] sm:$0xff] %vm973_vm8, %v990_v25  ;;  %v993_v34 = vmin.f32 %v985_v28, %v924_v30 }
 0x1f0   : > { %v922_v31 = vpop.xlane.xlu0 %921 }
 0x1f1   : > { %v992_v35 = vmin.f32 %v984_v29, %v922_v31  ;;  %1001 = vst.msk [vmem:[%s1746_s24 + $0x18] sm:$0xff] %vm973_vm8, %v993_v34 }
 0x1f2   : > { %v928_v38 = vpop.xlane.xlu1 %927 }
 0x1f3   : > { %1000 = vst.msk [vmem:[%s1746_s24 + $0x10] sm:$0xff] %vm973_vm8, %v992_v35  ;;  %v995_v44 = vmin.f32 %v987_v36, %v928_v38 }
 0x1f4   : > { %v926_v39 = vpop.xlane.xlu0 %925 }
 0x1f5   : > { %v994_v45 = vmin.f32 %v986_v37, %v926_v39  ;;  %1003 = vst.msk [vmem:[%s1746_s24 + $0x28] sm:$0xff] %vm973_vm8, %v995_v44 }
 0x1f6   : > { %v932_v48 = vpop.xlane.xlu1 %931 }
 0x1f7   : > { %1002 = vst.msk [vmem:[%s1746_s24 + $0x20] sm:$0xff] %vm973_vm8, %v994_v45  ;;  %v997_v50 = vmin.f32 %v989_v46, %v932_v48 }
 0x1f8   : > { %v930_v49 = vpop.xlane.xlu0 %929 }
 0x1f9   : > { %v996_v51 = vmin.f32 %v988_v47, %v930_v49  ;;  %1005 = vst.msk [vmem:[%s1746_s24 + $0x38] sm:$0xff] %vm973_vm8, %v997_v50 }
 0x1fa   : > { %v944_v55 = vpop.xlane.xlu1 %943 }
 0x1fb   : > { %1004 = vst.msk [vmem:[%s1746_s24 + $0x30] sm:$0xff] %vm973_vm8, %v996_v51  ;;  %v1015_v57 = vmax.f32 %v1007_v53, %v944_v55 }
 0x1fc   : > { %v942_v56 = vpop.xlane.xlu0 %941 }
 0x1fd   : > { %v1014_v3 = vmax.f32 %v1006_v54, %v942_v56  ;;  %1023 = vst.msk [vmem:[%s1752_s12 + $0x8] sm:$0xff] %vm973_vm8, %v1015_v57 }
 0x1fe   : > { %v948_v5 = vpop.xlane.xlu1 %947 }
 0x1ff   : > { %1022 = vst.msk [vmem:[%s1752_s12] sm:$0xff] %vm973_vm8, %v1014_v3  ;;  %v1017_v7 = vmax.f32 %v1009_v52, %v948_v5 }
 0x200   : > { %v946_v6 = vpop.xlane.xlu0 %945 }
 0x201   : > { %v1016_v8 = vmax.f32 %v1008_v4, %v946_v6  ;;  %1025 = vst.msk [vmem:[%s1752_s12 + $0x18] sm:$0xff] %vm973_vm8, %v1017_v7 }
 0x202   : > { %v952_v11 = vpop.xlane.xlu1 %951 }
 0x203   : > { %1024 = vst.msk [vmem:[%s1752_s12 + $0x10] sm:$0xff] %vm973_vm8, %v1016_v8  ;;  %v1019_v13 = vmax.f32 %v1011_v9, %v952_v11 }
 0x204   : > { %v950_v12 = vpop.xlane.xlu0 %949 }
 0x205   : > { %v1018_v14 = vmax.f32 %v1010_v10, %v950_v12  ;;  %1027 = vst.msk [vmem:[%s1752_s12 + $0x28] sm:$0xff] %vm973_vm8, %v1019_v13 }
 0x206   : > { %v956_v17 = vpop.xlane.xlu1 %955 }
 0x207   : > { %1026 = vst.msk [vmem:[%s1752_s12 + $0x20] sm:$0xff] %vm973_vm8, %v1018_v14  ;;  %v1021_v19 = vmax.f32 %v1013_v15, %v956_v17 }
 0x208   : > { %v954_v18 = vpop.xlane.xlu0 %953 }
 0x209   : > { %v1020_v20 = vmax.f32 %v1012_v16, %v954_v18  ;;  %1029 = vst.msk [vmem:[%s1752_s12 + $0x38] sm:$0xff] %vm973_vm8, %v1021_v19 }
 0x20b   : > { %1028 = vst.msk [vmem:[%s1752_s12 + $0x30] sm:$0xff] %vm973_vm8, %v1020_v20 }
 0x20c PF: > { %1032 = sbr.rel (%p816_p0) target bundleno = 715 (0x2cb), region = 56  ;;  %vm2443_vm11 = vcmp.eq.s32.totalorder (!%p816_p0), %v1877_v62, %v1865_v58  ;;  %vm2444_vm9 = vcmp.eq.s32.totalorder (!%p816_p0), %v1869_v60, %v1865_v58  ;;  %vm2445_vm3 = vcmp.eq.s32.totalorder (!%p816_p0), %v1875_v61, %v1865_v58  ;;  %vm2446_vm4 = vcmp.eq.s32.totalorder (!%p816_p0), %v1867_v59, %v1865_v58  ;;  %v1101_v37 = vld [vmem:[%s1739_s21 + $0x20] sm:$0xff] (!%p816_p0)  ;;  %v1104_v46 = vld [vmem:[%s1739_s21 + $0x38] sm:$0xff] (!%p816_p0)  ;;  %v1103_v47 = vld [vmem:[%s1739_s21 + $0x30] sm:$0xff] (!%p816_p0) }
 0x20d   : > { %v1035_v21 = vsel (!%p816_p0), %vm2443_vm11, %v1914_v42, 0.0  ;;  %v1033_v22 = vsel (!%p816_p0), %vm2444_vm9, %v1906_v32, 0.0  ;;  %v1036_v23 = vsel (!%p816_p0), %vm2445_vm3, %v1910_v40, 0.0  ;;  %v1034_v24 = vsel (!%p816_p0), %vm2446_vm4, %v1902_v26, 0.0  ;;  %vm2451_vm10 = vmmov (!%p816_p0), %vm2446_vm4  ;;  %v1123_v53 = vld [vmem:[%s1746_s24 + $0x8] sm:$0xff] (!%p816_p0)  ;;  %v1122_v54 = vld [vmem:[%s1746_s24] sm:$0xff] (!%p816_p0) }
 0x20e   : > { %1045 = vmax.xlane.f32.xlu1 (!%p816_p0), %v1035_v21  ;;  %1041 = vmax.xlane.f32.xlu0 (!%p816_p0), %v1033_v22  ;;  %vm2447_vm5 = vcmp.eq.s32.totalorder (!%p816_p0), %v1883_v63, %v1865_v58  ;;  %vm2448_vm6 = vcmp.eq.s32.totalorder (!%p816_p0), %v1885_v0, %v1865_v58  ;;  %vm2449_vm7 = vcmp.eq.s32.totalorder (!%p816_p0), %v1891_v1, %v1865_v58  ;;  %v1058_v31 = vsel (!%p816_p0), %vm2451_vm10, 8.5e+37, %v1902_v26  ;;  %vm2452_vm13 = vmmov (!%p816_p0), %vm2444_vm9  ;;  %v1097_v63 = vld [vmem:[%s1739_s21] sm:$0xff] (!%p816_p0)  ;;  %v1125_v52 = vld [vmem:[%s1746_s24 + $0x18] sm:$0xff] (!%p816_p0) }
 0x20f   : > { %v1038_v25 = vsel (!%p816_p0), %vm2447_vm5, %v1904_v27, 0.0  ;;  %v1037_v28 = vsel (!%p816_p0), %vm2448_vm6, %v1908_v33, 0.0  ;;  %v1040_v29 = vsel (!%p816_p0), %vm2449_vm7, %v1912_v41, 0.0  ;;  %vm2450_vm1 = vcmp.eq.s32.totalorder (!%p816_p0), %v1893_v2, %v1865_v58  ;;  %vm2453_vm14 = vmmov (!%p816_p0), %vm2445_vm3  ;;  %v1099_v58 = vld [vmem:[%s1739_s21 + $0x10] sm:$0xff] (!%p816_p0)  ;;  %v1127_v9 = vld [vmem:[%s1746_s24 + $0x28] sm:$0xff] (!%p816_p0) }
 0x210   : > { %v1039_v30 = vsel (!%p816_p0), %vm2450_vm1, %v1916_v43, 0.0  ;;  %v1057_v34 = vsel (!%p816_p0), %vm2452_vm13, 8.5e+37, %v1906_v32  ;;  %v1060_v35 = vsel (!%p816_p0), %vm2453_vm14, 8.5e+37, %v1910_v40  ;;  %vm2454_vm0 = vmmov (!%p816_p0), %vm2443_vm11  ;;  %vm1113_vm11 = vcmask (!%p816_p0), 7168  }
 0x211   : > { %v1059_v36 = vsel (!%p816_p0), %vm2454_vm0, 8.5e+37, %v1914_v42  ;;  %vm2455_vm12 = vmmov (!%p816_p0), %vm2447_vm5  ;;  %v1124_v4 = vld [vmem:[%s1746_s24 + $0x10] sm:$0xff] (!%p816_p0)  ;;  %v1126_v10 = vld [vmem:[%s1746_s24 + $0x20] sm:$0xff] (!%p816_p0) }
 0x212   : > { %1047 = vmax.xlane.f32.xlu1 (!%p816_p0), %v1036_v23  ;;  %1043 = vmax.xlane.f32.xlu0 (!%p816_p0), %v1034_v24  ;;  %v1062_v59 = vsel (!%p816_p0), %vm2455_vm12, 8.5e+37, %v1904_v27  ;;  %vm2456_vm15 = vmmov (!%p816_p0), %vm2448_vm6  ;;  %v1129_v15 = vld [vmem:[%s1746_s24 + $0x38] sm:$0xff] (!%p816_p0)  ;;  %v1128_v16 = vld [vmem:[%s1746_s24 + $0x30] sm:$0xff] (!%p816_p0) }
 0x213   : > { %v1061_v60 = vsel %vm2456_vm15, 8.5e+37, %v1908_v33  ;;  %vm2457_vm2 = vmmov %vm2449_vm7  ;;  %v1147_v21 = vld [vmem:[%s1752_s12 + $0x8] sm:$0xff]  ;;  %v1146_v22 = vld [vmem:[%s1752_s12] sm:$0xff] }
 0x214   : > { %v1064_v61 = vsel %vm2457_vm2, 8.5e+37, %v1912_v41  ;;  %vm2458_vm8 = vmmov %vm2450_vm1 }
 0x215   : > { %v1063_v62 = vsel %vm2458_vm8, 8.5e+37, %v1916_v43 }
 0x216   : > { %1051 = vmax.xlane.f32.xlu1 %v1038_v25  ;;  %1049 = vmax.xlane.f32.xlu0 %v1037_v28 }
 0x21a   : > { %1055 = vmax.xlane.f32.xlu1 %v1040_v29  ;;  %1053 = vmax.xlane.f32.xlu0 %v1039_v30  ;;  %v1149_v29 = vld [vmem:[%s1752_s12 + $0x18] sm:$0xff]  ;;  %v1148_v30 = vld [vmem:[%s1752_s12 + $0x10] sm:$0xff] }
 0x21e   : > { %1067 = vmin.xlane.f32.xlu1 %v1058_v31  ;;  %1065 = vmin.xlane.f32.xlu0 %v1057_v34 }
 0x222   : > { %1071 = vmin.xlane.f32.xlu1 %v1060_v35  ;;  %1069 = vmin.xlane.f32.xlu0 %v1059_v36 }
 0x226   : > { %1075 = vmin.xlane.f32.xlu1 %v1062_v59  ;;  %1073 = vmin.xlane.f32.xlu0 %v1061_v60  ;;  %v1151_v59 = vld [vmem:[%s1752_s12 + $0x28] sm:$0xff]  ;;  %v1150_v60 = vld [vmem:[%s1752_s12 + $0x20] sm:$0xff] }
 0x22a   : > { %1079 = vmin.xlane.f32.xlu1 %v1064_v61  ;;  %1077 = vmin.xlane.f32.xlu0 %v1063_v62 }
 0x22e   : > { %1083 = vmax.xlane.f32.xlu1 %v1902_v26  ;;  %1081 = vmax.xlane.f32.xlu0 %v1906_v32  ;;  %v1100_v32 = vld [vmem:[%s1739_s21 + $0x18] sm:$0xff] }
 0x232   : > { %1087 = vmax.xlane.f32.xlu1 %v1910_v40  ;;  %1085 = vmax.xlane.f32.xlu0 %v1914_v42 }
 0x236   : > { %1091 = vmax.xlane.f32.xlu1 %v1904_v27  ;;  %1089 = vmax.xlane.f32.xlu0 %v1908_v33  ;;  %v1098_v27 = vld [vmem:[%s1739_s21 + $0x8] sm:$0xff] }
 0x23a   : > { %1095 = vmax.xlane.f32.xlu1 %v1912_v41  ;;  %1093 = vmax.xlane.f32.xlu0 %v1916_v43  ;;  %v1102_v43 = vld [vmem:[%s1739_s21 + $0x28] sm:$0xff] }
 0x29b   : > { %v1046_v0 = vpop.xlane.xlu1 %1045  ;;  %v1042_v1 = vpop.xlane.xlu0 %1041 }
 0x29c   : > { %v1107_v2 = vmax.f32 %v1099_v58, %v1046_v0  ;;  %v1105_v26 = vmax.f32 %v1097_v63, %v1042_v1  ;;  %v1153_v0 = vld [vmem:[%s1752_s12 + $0x38] sm:$0xff]  ;;  %v1152_v1 = vld [vmem:[%s1752_s12 + $0x30] sm:$0xff] }
 0x29e   : > { %1116 = vst.msk [vmem:[%s1739_s21 + $0x10] sm:$0xff] %vm1113_vm11, %v1107_v2  ;;  %1114 = vst.msk [vmem:[%s1739_s21] sm:$0xff] %vm1113_vm11, %v1105_v26 }
 0x29f   : > { %v1048_v33 = vpop.xlane.xlu1 %1047  ;;  %v1044_v40 = vpop.xlane.xlu0 %1043 }
 0x2a0   : > { %v1108_v41 = vmax.f32 %v1100_v32, %v1048_v33  ;;  %v1106_v42 = vmax.f32 %v1098_v27, %v1044_v40 }
 0x2a2   : > { %1117 = vst.msk [vmem:[%s1739_s21 + $0x18] sm:$0xff] %vm1113_vm11, %v1108_v41  ;;  %1115 = vst.msk [vmem:[%s1739_s21 + $0x8] sm:$0xff] %vm1113_vm11, %v1106_v42 }
 0x2a3   : > { %v1052_v38 = vpop.xlane.xlu1 %1051  ;;  %v1050_v39 = vpop.xlane.xlu0 %1049 }
 0x2a4   : > { %v1110_v44 = vmax.f32 %v1102_v43, %v1052_v38  ;;  %v1109_v45 = vmax.f32 %v1101_v37, %v1050_v39 }
 0x2a6   : > { %1119 = vst.msk [vmem:[%s1739_s21 + $0x28] sm:$0xff] %vm1113_vm11, %v1110_v44  ;;  %1118 = vst.msk [vmem:[%s1739_s21 + $0x20] sm:$0xff] %vm1113_vm11, %v1109_v45 }
 0x2a7   : > { %v1056_v48 = vpop.xlane.xlu1 %1055  ;;  %v1054_v49 = vpop.xlane.xlu0 %1053 }
 0x2a8   : > { %v1112_v50 = vmax.f32 %v1104_v46, %v1056_v48  ;;  %v1111_v51 = vmax.f32 %v1103_v47, %v1054_v49 }
 0x2aa   : > { %1121 = vst.msk [vmem:[%s1739_s21 + $0x38] sm:$0xff] %vm1113_vm11, %v1112_v50  ;;  %1120 = vst.msk [vmem:[%s1739_s21 + $0x30] sm:$0xff] %vm1113_vm11, %v1111_v51 }
 0x2ab   : > { %v1068_v55 = vpop.xlane.xlu1 %1067  ;;  %v1066_v56 = vpop.xlane.xlu0 %1065 }
 0x2ac   : > { %v1131_v57 = vmin.f32 %v1123_v53, %v1068_v55  ;;  %v1130_v3 = vmin.f32 %v1122_v54, %v1066_v56 }
 0x2ae   : > { %1139 = vst.msk [vmem:[%s1746_s24 + $0x8] sm:$0xff] %vm1113_vm11, %v1131_v57  ;;  %1138 = vst.msk [vmem:[%s1746_s24] sm:$0xff] %vm1113_vm11, %v1130_v3 }
 0x2af   : > { %v1072_v5 = vpop.xlane.xlu1 %1071  ;;  %v1070_v6 = vpop.xlane.xlu0 %1069 }
 0x2b0   : > { %v1133_v7 = vmin.f32 %v1125_v52, %v1072_v5  ;;  %v1132_v8 = vmin.f32 %v1124_v4, %v1070_v6 }
 0x2b2   : > { %1141 = vst.msk [vmem:[%s1746_s24 + $0x18] sm:$0xff] %vm1113_vm11, %v1133_v7  ;;  %1140 = vst.msk [vmem:[%s1746_s24 + $0x10] sm:$0xff] %vm1113_vm11, %v1132_v8 }
 0x2b3   : > { %v1076_v11 = vpop.xlane.xlu1 %1075  ;;  %v1074_v12 = vpop.xlane.xlu0 %1073 }
 0x2b4   : > { %v1135_v13 = vmin.f32 %v1127_v9, %v1076_v11  ;;  %v1134_v14 = vmin.f32 %v1126_v10, %v1074_v12 }
 0x2b6   : > { %1143 = vst.msk [vmem:[%s1746_s24 + $0x28] sm:$0xff] %vm1113_vm11, %v1135_v13  ;;  %1142 = vst.msk [vmem:[%s1746_s24 + $0x20] sm:$0xff] %vm1113_vm11, %v1134_v14 }
 0x2b7   : > { %v1080_v17 = vpop.xlane.xlu1 %1079  ;;  %v1078_v18 = vpop.xlane.xlu0 %1077 }
 0x2b8   : > { %v1137_v19 = vmin.f32 %v1129_v15, %v1080_v17  ;;  %v1136_v20 = vmin.f32 %v1128_v16, %v1078_v18 }
 0x2ba   : > { %1145 = vst.msk [vmem:[%s1746_s24 + $0x38] sm:$0xff] %vm1113_vm11, %v1137_v19  ;;  %1144 = vst.msk [vmem:[%s1746_s24 + $0x30] sm:$0xff] %vm1113_vm11, %v1136_v20 }
 0x2bb   : > { %v1084_v23 = vpop.xlane.xlu1 %1083  ;;  %v1082_v24 = vpop.xlane.xlu0 %1081 }
 0x2bc   : > { %v1155_v25 = vmax.f32 %v1147_v21, %v1084_v23  ;;  %v1154_v28 = vmax.f32 %v1146_v22, %v1082_v24 }
 0x2be   : > { %1163 = vst.msk [vmem:[%s1752_s12 + $0x8] sm:$0xff] %vm1113_vm11, %v1155_v25  ;;  %1162 = vst.msk [vmem:[%s1752_s12] sm:$0xff] %vm1113_vm11, %v1154_v28 }
 0x2bf   : > { %v1088_v31 = vpop.xlane.xlu1 %1087  ;;  %v1086_v34 = vpop.xlane.xlu0 %1085 }
 0x2c0   : > { %v1157_v35 = vmax.f32 %v1149_v29, %v1088_v31  ;;  %v1156_v36 = vmax.f32 %v1148_v30, %v1086_v34 }
 0x2c2   : > { %1165 = vst.msk [vmem:[%s1752_s12 + $0x18] sm:$0xff] %vm1113_vm11, %v1157_v35  ;;  %1164 = vst.msk [vmem:[%s1752_s12 + $0x10] sm:$0xff] %vm1113_vm11, %v1156_v36 }
 0x2c3   : > { %v1092_v61 = vpop.xlane.xlu1 %1091  ;;  %v1090_v62 = vpop.xlane.xlu0 %1089 }
 0x2c4   : > { %v1159_v58 = vmax.f32 %v1151_v59, %v1092_v61  ;;  %v1158_v63 = vmax.f32 %v1150_v60, %v1090_v62 }
 0x2c6   : > { %1167 = vst.msk [vmem:[%s1752_s12 + $0x28] sm:$0xff] %vm1113_vm11, %v1159_v58  ;;  %1166 = vst.msk [vmem:[%s1752_s12 + $0x20] sm:$0xff] %vm1113_vm11, %v1158_v63 }
 0x2c7   : > { %v1096_v2 = vpop.xlane.xlu1 %1095  ;;  %v1094_v26 = vpop.xlane.xlu0 %1093 }
 0x2c8   : > { %v1161_v32 = vmax.f32 %v1153_v0, %v1096_v2  ;;  %v1160_v27 = vmax.f32 %v1152_v1, %v1094_v26 }
 0x2ca   : > { %1169 = vst.msk [vmem:[%s1752_s12 + $0x38] sm:$0xff] %vm1113_vm11, %v1161_v32  ;;  %1168 = vst.msk [vmem:[%s1752_s12 + $0x30] sm:$0xff] %vm1113_vm11, %v1160_v27 }
 0x2cb PF: > { %s19_s9 = sadd.s32 1, %s1632_s9   ;;  %s2459_s27 = smov %s1624_s29 }
 0x2cc   : > { %p16_p1 = scmp.ge.s32.totalorder %s19_s9, 10   ;;  %s2460_s28 = smov %s1628_s30 }
 0x2cd   : > { %s2461_s29 = smov %s2464_s10  ;;  %s2462_s30 = smov %s2468_s11 }
 0x2ce   :  { %18 = sbr.rel (!%p16_p1) target bundleno = 3 (0x3), region = 125 }

</bundles_post_ra>
